<compile_context>
chip_gen: v7x
topology: tpu7x:2x2x1
jax: 0.10.0
libtpu: 0.0.40
codegen_flags: <defaults>
</compile_context>

<pallas_src>
import functools
import math

import jax
import jax.numpy as jnp
from jax.experimental import pallas as pl
from jax.experimental.pallas import tpu as pltpu

BN_EPS = 1e-5


def _residual_block_kernel(x_ref, m1_ref, m2_ref, aavg_ref,
                           g1_ref, be1_ref, al_ref, g2_ref, be2_ref,
                           out_ref, dn_scr, up_scr, *, H):
    NH, WC = x_ref.shape

    x2 = x_ref[...]                                    # (NH, WC), lane dense
    aavg = aavg_ref[...]                               # (WC, WC) channel-average matrix

    # Row masks: h == 0 (no image row above) / h == H-1 (no image row below).
    row = jax.lax.broadcasted_iota(jnp.int32, (NH, WC), 0)
    h_idx = row % H
    is_top = h_idx == 0
    is_bot = h_idx == H - 1

    def conv3x3(t, m_ref):
        # Row-shifted operands (dn[r] = t[r-1], up[r] = t[r+1]); rows that would
        # cross an image/batch boundary are masked to zero ('same' zero padding).
        dn_scr[1:NH, :] = t[0:NH - 1, :]
        up_scr[0:NH - 1, :] = t[1:NH, :]
        dn = jnp.where(is_top, 0.0, dn_scr[...])
        up = jnp.where(is_bot, 0.0, up_scr[...])
        acc = jnp.dot(dn, m_ref[0], preferred_element_type=jnp.float32)
        acc = acc + jnp.dot(t, m_ref[1], preferred_element_type=jnp.float32)
        acc = acc + jnp.dot(up, m_ref[2], preferred_element_type=jnp.float32)
        return acc

    def batchnorm(t, gamma, beta):
        # One pass over t: (t @ aavg) averages over the W groups inside the lane dim,
        # the row mean finishes the (N,H,W) reduction.  var = E[y^2] - E[y]^2 (biased,
        # as training-mode BatchNorm).  Scale/shift fused into one FMA.
        mean = jnp.mean(jnp.dot(t, aavg, preferred_element_type=jnp.float32),
                        axis=0, keepdims=True)         # (1, WC) per-channel mean
        ex2 = jnp.mean(jnp.dot(t * t, aavg, preferred_element_type=jnp.float32),
                       axis=0, keepdims=True)          # (1, WC) per-channel E[y^2]
        var = ex2 - mean * mean
        scale = gamma * jax.lax.rsqrt(var + BN_EPS)
        return t * scale + (beta - mean * scale)

    # conv1 (bias folded away by BN) + bn1 + PReLU
    y = conv3x3(x2, m1_ref)
    y = batchnorm(y, g1_ref[...], be1_ref[...])
    y = jnp.where(y >= 0.0, y, al_ref[...] * y)

    # conv2 + bn2
    z = conv3x3(y, m2_ref)
    z = batchnorm(z, g2_ref[...], be2_ref[...])

    # Residual add; the (NH, WC) output store is unmasked / lane dense.
    out_ref[...] = (z + x2).astype(out_ref.dtype)


def _banded_conv_matrices(w_hwio, W):
    """(3, 3, Cin, Cout) HWIO -> (3, W*C, W*C), one banded matrix per kh tap row.

    M[kh, w_in*C + cin, w_out*C + cout] = w[kh, w_in - w_out + 1, cin, cout], and
    zero where that kw index falls outside [0, 3) or w_in/w_out outside the image
    (which also implements the horizontal 'same' zero padding).
    """
    C = w_hwio.shape[2]
    shift = jnp.stack([jnp.eye(W, W, k=1 - kw, dtype=w_hwio.dtype)
                       for kw in range(3)])            # (3, W, W)
    m = jnp.einsum("kpq,hkio->hpiqo", shift, w_hwio)   # (3, W, C, W, C)
    return m.reshape(3, W * C, W * C)


def residual_block(x_nchw, p):
    N, C, H, W = x_nchw.shape
    NH, WC = N * H, W * C

    # Layout glue (outside the kernel): NCHW -> NHWC -> lane-dense (N*H, W*C).
    # The input is shipped to the kernel exactly once (no padded duplicate).
    x2 = jnp.transpose(x_nchw, (0, 2, 3, 1)).reshape(NH, WC).astype(jnp.float32)

    m1 = _banded_conv_matrices(p["w1"].astype(jnp.float32), W)
    m2 = _banded_conv_matrices(p["w2"].astype(jnp.float32), W)

    # Channel-averaging matrix for BN stats in the lane-dense layout:
    # (t @ aavg)[r, w*C + c] = mean over w' of t[r, w'*C + c].
    aavg = jnp.tile(jnp.eye(C, dtype=jnp.float32), (W, W)) / W

    def lane_tile(v):                                  # per-channel (C,) -> (1, W*C)
        return jnp.tile(v.reshape(1, C).astype(jnp.float32), (1, W))

    # NOTE: conv biases b1/b2 are intentionally NOT passed: training-mode BatchNorm
    # subtracts the batch mean right after each conv, cancelling them exactly.
    args = (x2, m1, m2, aavg,
            lane_tile(p["g1"]), lane_tile(p["be1"]), lane_tile(p["alpha"]),
            lane_tile(p["g2"]), lane_tile(p["be2"]))

    vmem = pl.BlockSpec(memory_space=pltpu.MemorySpace.VMEM)
    out2 = pl.pallas_call(
        functools.partial(_residual_block_kernel, H=H),
        out_shape=jax.ShapeDtypeStruct((NH, WC), jnp.float32),
        in_specs=[vmem] * len(args),
        out_specs=vmem,
        scratch_shapes=[pltpu.VMEM((NH, WC), jnp.float32),   # row-shift staging (dn)
                        pltpu.VMEM((NH, WC), jnp.float32)],  # row-shift staging (up)
        compiler_params=pltpu.CompilerParams(vmem_limit_bytes=32 * 1024 * 1024),
    )(*args)

    # TODO(synk): for large N*H*W (esp. v7x's 64 MiB VMEM / 2 TCs) tile the row dim with
    # a grid + two-pass BN (resident sum/sumsq accumulators); whole-array residency is
    # fine at these shapes.  BatchNorm running-stat buffer updates (a training-time side
    # effect) are not modeled; they do not affect the forward output.
    return jnp.transpose(out2.reshape(N, H, W, C), (0, 3, 1, 2))


def init_params(key, channels):
    """Deterministic synthetic params (PyTorch-style init, HWIO weight layout)."""
    ks = jax.random.split(key, 8)
    bound = 1.0 / math.sqrt(channels * 9)
    c = channels
    return {
        "w1": jax.random.uniform(ks[0], (3, 3, c, c), jnp.float32, -bound, bound),
        "b1": jax.random.uniform(ks[1], (1, 1, 1, c), jnp.float32, -bound, bound),
        "w2": jax.random.uniform(ks[2], (3, 3, c, c), jnp.float32, -bound, bound),
        "b2": jax.random.uniform(ks[3], (1, 1, 1, c), jnp.float32, -bound, bound),
        "g1": 1.0 + 0.1 * jax.random.normal(ks[4], (1, 1, 1, c), jnp.float32),
        "be1": 0.1 * jax.random.normal(ks[5], (1, 1, 1, c), jnp.float32),
        "g2": 1.0 + 0.1 * jax.random.normal(ks[6], (1, 1, 1, c), jnp.float32),
        "be2": 0.1 * jax.random.normal(ks[7], (1, 1, 1, c), jnp.float32),
        "alpha": jnp.full((1, 1, 1, c), 0.25, jnp.float32),        # nn.PReLU default
    }


def reference(x_nchw, p):
    """Pure-JAX reference matching the PyTorch forward (training-mode BN, with biases)."""
    x = jnp.transpose(x_nchw, (0, 2, 3, 1))

    def conv(y, w, b):
        return jax.lax.conv_general_dilated(
            y, w, (1, 1), "SAME",
            dimension_numbers=("NHWC", "HWIO", "NHWC")) + b

    def bn(y, g, be):
        m = jnp.mean(y, axis=(0, 1, 2), keepdims=True)
        v = jnp.mean((y - m) ** 2, axis=(0, 1, 2), keepdims=True)
        return (y - m) / jnp.sqrt(v + BN_EPS) * g + be

    y = conv(x, p["w1"], p["b1"])
    y = bn(y, p["g1"], p["be1"])
    y = jnp.where(y >= 0, y, p["alpha"] * y)
    z = conv(y, p["w2"], p["b2"])
    z = bn(z, p["g2"], p["be2"])
    return jnp.transpose(z + x, (0, 3, 1, 2))


if __name__ == "__main__":
    key = jax.random.PRNGKey(0)
    kx, kp = jax.random.split(key)

    N, C, H, W = 2, 8, 16, 16
    x = jax.random.normal(kx, (N, C, H, W), jnp.float32)
    params = init_params(kp, C)

    out = jax.block_until_ready(residual_block(x, params))
    ref = jax.block_until_ready(reference(x, params))

    assert out.shape == (N, C, H, W) and out.dtype == jnp.float32
    err = float(jnp.max(jnp.abs(out - ref)))
    assert jnp.allclose(out, ref, atol=1e-3, rtol=1e-3), f"max abs err {err}"

    print("KERNEL_OK")
</pallas_src>

<mosaic_0001>
module attributes {stable_mosaic.version = 11 : i64} {
  func.func @_residual_block_kernel(%arg0: memref<32x128xf32, #tpu.memory_space<vmem>>, %arg1: memref<3x128x128xf32, #tpu.memory_space<vmem>>, %arg2: memref<3x128x128xf32, #tpu.memory_space<vmem>>, %arg3: memref<128x128xf32, #tpu.memory_space<vmem>>, %arg4: memref<1x128xf32, #tpu.memory_space<vmem>>, %arg5: memref<1x128xf32, #tpu.memory_space<vmem>>, %arg6: memref<1x128xf32, #tpu.memory_space<vmem>>, %arg7: memref<1x128xf32, #tpu.memory_space<vmem>>, %arg8: memref<1x128xf32, #tpu.memory_space<vmem>>, %arg9: memref<32x128xf32, #tpu.memory_space<vmem>>, %arg10: memref<32x128xf32, #tpu.memory_space<vmem>>, %arg11: memref<32x128xf32, #tpu.memory_space<vmem>>) attributes {dimension_semantics = [], scalar_prefetch = 0 : i64, scratch_operands = 2 : i64, tpu.core_type = #tpu.core_type<tc>} {
    %c0 = arith.constant 0 : index
    %c0_0 = arith.constant 0 : index
    %0 = vector.load %arg0[%c0, %c0_0] : memref<32x128xf32, #tpu.memory_space<vmem>>, vector<32x128xf32>
    %c0_1 = arith.constant 0 : index
    %c0_2 = arith.constant 0 : index
    %1 = vector.load %arg3[%c0_1, %c0_2] : memref<128x128xf32, #tpu.memory_space<vmem>>, vector<128x128xf32>
    %2 = tpu.iota {dimensions = array<i32: 0>} : vector<32x128xi32>
    %c16_i32 = arith.constant 16 : i32
    %c0_i32 = arith.constant 0 : i32
    %3 = arith.cmpi eq, %c16_i32, %c0_i32 : i32
    %c1_i32 = arith.constant 1 : i32
    %4 = arith.select %3, %c1_i32, %c16_i32 : i32
    %5 = vector.broadcast %4 : i32 to vector<32x128xi32>
    %6 = arith.remsi %2, %5 : vector<32x128xi32>
    %c0_i32_3 = arith.constant 0 : i32
    %7 = vector.broadcast %c0_i32_3 : i32 to vector<32x128xi32>
    %8 = arith.cmpi ne, %6, %7 : vector<32x128xi32>
    %c0_i32_4 = arith.constant 0 : i32
    %9 = vector.broadcast %c0_i32_4 : i32 to vector<32x128xi32>
    %10 = arith.cmpi slt, %6, %9 : vector<32x128xi32>
    %c0_i32_5 = arith.constant 0 : i32
    %11 = arith.cmpi slt, %4, %c0_i32_5 : i32
    %12 = vector.broadcast %11 : i1 to vector<32x128xi1>
    %13 = vector.broadcast %12 : vector<32x128xi1> to vector<32x128xi1>
    %14 = arith.xori %10, %13 : vector<32x128xi1>
    %15 = arith.andi %14, %8 : vector<32x128xi1>
    %16 = vector.broadcast %4 : i32 to vector<32x128xi32>
    %17 = arith.addi %6, %16 : vector<32x128xi32>
    %18 = arith.select %15, %17, %6 : vector<32x128xi1>, vector<32x128xi32>
    %c0_i32_6 = arith.constant 0 : i32
    %19 = vector.broadcast %c0_i32_6 : i32 to vector<32x128xi32>
    %20 = arith.cmpi eq, %18, %19 : vector<32x128xi32>
    %c15_i32 = arith.constant 15 : i32
    %21 = vector.broadcast %c15_i32 : i32 to vector<32x128xi32>
    %22 = arith.cmpi eq, %18, %21 : vector<32x128xi32>
    %23 = vector.extract_strided_slice %0 {offsets = [0, 0], sizes = [31, 128], strides = [1, 1]} : vector<32x128xf32> to vector<31x128xf32>
    %c1 = arith.constant 1 : index
    %c0_7 = arith.constant 0 : index
    %24 = vector.load %arg10[%c1, %c0_7] : memref<32x128xf32, #tpu.memory_space<vmem>>, vector<31x128xf32>
    tpu.vector_store %arg10[%c1, %c0_7], %23 {strides = array<i32>} : memref<32x128xf32, #tpu.memory_space<vmem>>, vector<31x128xf32>,
    %25 = vector.extract_strided_slice %0 {offsets = [1, 0], sizes = [31, 128], strides = [1, 1]} : vector<32x128xf32> to vector<31x128xf32>
    %c0_8 = arith.constant 0 : index
    %c0_9 = arith.constant 0 : index
    %26 = vector.load %arg11[%c0_8, %c0_9] : memref<32x128xf32, #tpu.memory_space<vmem>>, vector<31x128xf32>
    tpu.vector_store %arg11[%c0_8, %c0_9], %25 {strides = array<i32>} : memref<32x128xf32, #tpu.memory_space<vmem>>, vector<31x128xf32>,
    %c0_10 = arith.constant 0 : index
    %c0_11 = arith.constant 0 : index
    %27 = vector.load %arg10[%c0_10, %c0_11] : memref<32x128xf32, #tpu.memory_space<vmem>>, vector<32x128xf32>
    %cst = arith.constant 0.000000e+00 : f32
    %28 = vector.broadcast %cst : f32 to vector<32x128xf32>
    %29 = arith.select %20, %28, %27 : vector<32x128xi1>, vector<32x128xf32>
    %c0_12 = arith.constant 0 : index
    %c0_13 = arith.constant 0 : index
    %30 = vector.load %arg11[%c0_12, %c0_13] : memref<32x128xf32, #tpu.memory_space<vmem>>, vector<32x128xf32>
    %cst_14 = arith.constant 0.000000e+00 : f32
    %31 = vector.broadcast %cst_14 : f32 to vector<32x128xf32>
    %32 = arith.select %22, %31, %30 : vector<32x128xi1>, vector<32x128xf32>
    %c0_15 = arith.constant 0 : index
    %c0_16 = arith.constant 0 : index
    %c0_17 = arith.constant 0 : index
    %33 = vector.load %arg1[%c0_15, %c0_16, %c0_17] : memref<3x128x128xf32, #tpu.memory_space<vmem>>, vector<1x128x128xf32>
    %34 = vector.shape_cast %33 : vector<1x128x128xf32> to vector<128x128xf32>
    %cst_18 = arith.constant dense<0.000000e+00> : vector<32x128xf32>
    %35 = tpu.matmul %29, %34, %cst_18 {dimension_numbers = #tpu.dot_dimension_numbers<[1], [0], [0], [1], [0, 0, 1, 1], [], []>} : vector<32x128xf32>, vector<128x128xf32>, vector<32x128xf32> -> vector<32x128xf32>
    %c1_19 = arith.constant 1 : index
    %c0_20 = arith.constant 0 : index
    %c0_21 = arith.constant 0 : index
    %36 = vector.load %arg1[%c1_19, %c0_20, %c0_21] : memref<3x128x128xf32, #tpu.memory_space<vmem>>, vector<1x128x128xf32>
    %37 = vector.shape_cast %36 : vector<1x128x128xf32> to vector<128x128xf32>
    %cst_22 = arith.constant dense<0.000000e+00> : vector<32x128xf32>
    %38 = tpu.matmul %0, %37, %cst_22 {dimension_numbers = #tpu.dot_dimension_numbers<[1], [0], [0], [1], [0, 0, 1, 1], [], []>} : vector<32x128xf32>, vector<128x128xf32>, vector<32x128xf32> -> vector<32x128xf32>
    %39 = arith.addf %35, %38 : vector<32x128xf32>
    %c2 = arith.constant 2 : index
    %c0_23 = arith.constant 0 : index
    %c0_24 = arith.constant 0 : index
    %40 = vector.load %arg1[%c2, %c0_23, %c0_24] : memref<3x128x128xf32, #tpu.memory_space<vmem>>, vector<1x128x128xf32>
    %41 = vector.shape_cast %40 : vector<1x128x128xf32> to vector<128x128xf32>
    %cst_25 = arith.constant dense<0.000000e+00> : vector<32x128xf32>
    %42 = tpu.matmul %32, %41, %cst_25 {dimension_numbers = #tpu.dot_dimension_numbers<[1], [0], [0], [1], [0, 0, 1, 1], [], []>} : vector<32x128xf32>, vector<128x128xf32>, vector<32x128xf32> -> vector<32x128xf32>
    %43 = arith.addf %39, %42 : vector<32x128xf32>
    %c0_26 = arith.constant 0 : index
    %c0_27 = arith.constant 0 : index
    %44 = vector.load %arg4[%c0_26, %c0_27] : memref<1x128xf32, #tpu.memory_space<vmem>>, vector<1x128xf32>
    %c0_28 = arith.constant 0 : index
    %c0_29 = arith.constant 0 : index
    %45 = vector.load %arg5[%c0_28, %c0_29] : memref<1x128xf32, #tpu.memory_space<vmem>>, vector<1x128xf32>
    %cst_30 = arith.constant dense<0.000000e+00> : vector<32x128xf32>
    %46 = tpu.matmul %43, %1, %cst_30 {dimension_numbers = #tpu.dot_dimension_numbers<[1], [0], [0], [1], [0, 0, 1, 1], [], []>} : vector<32x128xf32>, vector<128x128xf32>, vector<32x128xf32> -> vector<32x128xf32>
    %cst_31 = arith.constant dense<0.000000e+00> : vector<128xf32>
    %47 = vector.multi_reduction <add>, %46, %cst_31 [0] : vector<32x128xf32> to vector<128xf32>
    %48 = vector.shape_cast %47 : vector<128xf32> to vector<1x128xf32>
    %cst_32 = arith.constant 3.200000e+01 : f32
    %49 = vector.broadcast %cst_32 : f32 to vector<1x128xf32>
    %50 = arith.divf %48, %49 : vector<1x128xf32>
    %51 = arith.mulf %43, %43 : vector<32x128xf32>
    %cst_33 = arith.constant dense<0.000000e+00> : vector<32x128xf32>
    %52 = tpu.matmul %51, %1, %cst_33 {dimension_numbers = #tpu.dot_dimension_numbers<[1], [0], [0], [1], [0, 0, 1, 1], [], []>} : vector<32x128xf32>, vector<128x128xf32>, vector<32x128xf32> -> vector<32x128xf32>
    %cst_34 = arith.constant dense<0.000000e+00> : vector<128xf32>
    %53 = vector.multi_reduction <add>, %52, %cst_34 [0] : vector<32x128xf32> to vector<128xf32>
    %54 = vector.shape_cast %53 : vector<128xf32> to vector<1x128xf32>
    %cst_35 = arith.constant 3.200000e+01 : f32
    %55 = vector.broadcast %cst_35 : f32 to vector<1x128xf32>
    %56 = arith.divf %54, %55 : vector<1x128xf32>
    %57 = arith.mulf %50, %50 : vector<1x128xf32>
    %58 = arith.subf %56, %57 : vector<1x128xf32>
    %cst_36 = arith.constant 9.99999974E-6 : f32
    %59 = vector.broadcast %cst_36 : f32 to vector<1x128xf32>
    %60 = arith.addf %58, %59 : vector<1x128xf32>
    %61 = math.rsqrt %60 : vector<1x128xf32>
    %62 = arith.mulf %44, %61 : vector<1x128xf32>
    %63 = vector.broadcast %62 : vector<1x128xf32> to vector<32x128xf32>
    %64 = arith.mulf %43, %63 : vector<32x128xf32>
    %65 = arith.mulf %50, %62 : vector<1x128xf32>
    %66 = arith.subf %45, %65 : vector<1x128xf32>
    %67 = vector.broadcast %66 : vector<1x128xf32> to vector<32x128xf32>
    %68 = arith.addf %64, %67 : vector<32x128xf32>
    %cst_37 = arith.constant 0.000000e+00 : f32
    %69 = vector.broadcast %cst_37 : f32 to vector<32x128xf32>
    %70 = arith.cmpf oge, %68, %69 : vector<32x128xf32>
    %c0_38 = arith.constant 0 : index
    %c0_39 = arith.constant 0 : index
    %71 = vector.load %arg6[%c0_38, %c0_39] : memref<1x128xf32, #tpu.memory_space<vmem>>, vector<1x128xf32>
    %72 = vector.broadcast %71 : vector<1x128xf32> to vector<32x128xf32>
    %73 = arith.mulf %72, %68 : vector<32x128xf32>
    %74 = arith.select %70, %68, %73 : vector<32x128xi1>, vector<32x128xf32>
    %75 = vector.extract_strided_slice %74 {offsets = [0, 0], sizes = [31, 128], strides = [1, 1]} : vector<32x128xf32> to vector<31x128xf32>
    %c1_40 = arith.constant 1 : index
    %c0_41 = arith.constant 0 : index
    %76 = vector.load %arg10[%c1_40, %c0_41] : memref<32x128xf32, #tpu.memory_space<vmem>>, vector<31x128xf32>
    tpu.vector_store %arg10[%c1_40, %c0_41], %75 {strides = array<i32>} : memref<32x128xf32, #tpu.memory_space<vmem>>, vector<31x128xf32>,
    %77 = vector.extract_strided_slice %74 {offsets = [1, 0], sizes = [31, 128], strides = [1, 1]} : vector<32x128xf32> to vector<31x128xf32>
    %c0_42 = arith.constant 0 : index
    %c0_43 = arith.constant 0 : index
    %78 = vector.load %arg11[%c0_42, %c0_43] : memref<32x128xf32, #tpu.memory_space<vmem>>, vector<31x128xf32>
    tpu.vector_store %arg11[%c0_42, %c0_43], %77 {strides = array<i32>} : memref<32x128xf32, #tpu.memory_space<vmem>>, vector<31x128xf32>,
    %c0_44 = arith.constant 0 : index
    %c0_45 = arith.constant 0 : index
    %79 = vector.load %arg10[%c0_44, %c0_45] : memref<32x128xf32, #tpu.memory_space<vmem>>, vector<32x128xf32>
    %cst_46 = arith.constant 0.000000e+00 : f32
    %80 = vector.broadcast %cst_46 : f32 to vector<32x128xf32>
    %81 = arith.select %20, %80, %79 : vector<32x128xi1>, vector<32x128xf32>
    %c0_47 = arith.constant 0 : index
    %c0_48 = arith.constant 0 : index
    %82 = vector.load %arg11[%c0_47, %c0_48] : memref<32x128xf32, #tpu.memory_space<vmem>>, vector<32x128xf32>
    %cst_49 = arith.constant 0.000000e+00 : f32
    %83 = vector.broadcast %cst_49 : f32 to vector<32x128xf32>
    %84 = arith.select %22, %83, %82 : vector<32x128xi1>, vector<32x128xf32>
    %c0_50 = arith.constant 0 : index
    %c0_51 = arith.constant 0 : index
    %c0_52 = arith.constant 0 : index
    %85 = vector.load %arg2[%c0_50, %c0_51, %c0_52] : memref<3x128x128xf32, #tpu.memory_space<vmem>>, vector<1x128x128xf32>
    %86 = vector.shape_cast %85 : vector<1x128x128xf32> to vector<128x128xf32>
    %cst_53 = arith.constant dense<0.000000e+00> : vector<32x128xf32>
    %87 = tpu.matmul %81, %86, %cst_53 {dimension_numbers = #tpu.dot_dimension_numbers<[1], [0], [0], [1], [0, 0, 1, 1], [], []>} : vector<32x128xf32>, vector<128x128xf32>, vector<32x128xf32> -> vector<32x128xf32>
    %c1_54 = arith.constant 1 : index
    %c0_55 = arith.constant 0 : index
    %c0_56 = arith.constant 0 : index
    %88 = vector.load %arg2[%c1_54, %c0_55, %c0_56] : memref<3x128x128xf32, #tpu.memory_space<vmem>>, vector<1x128x128xf32>
    %89 = vector.shape_cast %88 : vector<1x128x128xf32> to vector<128x128xf32>
    %cst_57 = arith.constant dense<0.000000e+00> : vector<32x128xf32>
    %90 = tpu.matmul %74, %89, %cst_57 {dimension_numbers = #tpu.dot_dimension_numbers<[1], [0], [0], [1], [0, 0, 1, 1], [], []>} : vector<32x128xf32>, vector<128x128xf32>, vector<32x128xf32> -> vector<32x128xf32>
    %91 = arith.addf %87, %90 : vector<32x128xf32>
    %c2_58 = arith.constant 2 : index
    %c0_59 = arith.constant 0 : index
    %c0_60 = arith.constant 0 : index
    %92 = vector.load %arg2[%c2_58, %c0_59, %c0_60] : memref<3x128x128xf32, #tpu.memory_space<vmem>>, vector<1x128x128xf32>
    %93 = vector.shape_cast %92 : vector<1x128x128xf32> to vector<128x128xf32>
    %cst_61 = arith.constant dense<0.000000e+00> : vector<32x128xf32>
    %94 = tpu.matmul %84, %93, %cst_61 {dimension_numbers = #tpu.dot_dimension_numbers<[1], [0], [0], [1], [0, 0, 1, 1], [], []>} : vector<32x128xf32>, vector<128x128xf32>, vector<32x128xf32> -> vector<32x128xf32>
    %95 = arith.addf %91, %94 : vector<32x128xf32>
    %c0_62 = arith.constant 0 : index
    %c0_63 = arith.constant 0 : index
    %96 = vector.load %arg7[%c0_62, %c0_63] : memref<1x128xf32, #tpu.memory_space<vmem>>, vector<1x128xf32>
    %c0_64 = arith.constant 0 : index
    %c0_65 = arith.constant 0 : index
    %97 = vector.load %arg8[%c0_64, %c0_65] : memref<1x128xf32, #tpu.memory_space<vmem>>, vector<1x128xf32>
    %cst_66 = arith.constant dense<0.000000e+00> : vector<32x128xf32>
    %98 = tpu.matmul %95, %1, %cst_66 {dimension_numbers = #tpu.dot_dimension_numbers<[1], [0], [0], [1], [0, 0, 1, 1], [], []>} : vector<32x128xf32>, vector<128x128xf32>, vector<32x128xf32> -> vector<32x128xf32>
    %cst_67 = arith.constant dense<0.000000e+00> : vector<128xf32>
    %99 = vector.multi_reduction <add>, %98, %cst_67 [0] : vector<32x128xf32> to vector<128xf32>
    %100 = vector.shape_cast %99 : vector<128xf32> to vector<1x128xf32>
    %cst_68 = arith.constant 3.200000e+01 : f32
    %101 = vector.broadcast %cst_68 : f32 to vector<1x128xf32>
    %102 = arith.divf %100, %101 : vector<1x128xf32>
    %103 = arith.mulf %95, %95 : vector<32x128xf32>
    %cst_69 = arith.constant dense<0.000000e+00> : vector<32x128xf32>
    %104 = tpu.matmul %103, %1, %cst_69 {dimension_numbers = #tpu.dot_dimension_numbers<[1], [0], [0], [1], [0, 0, 1, 1], [], []>} : vector<32x128xf32>, vector<128x128xf32>, vector<32x128xf32> -> vector<32x128xf32>
    %cst_70 = arith.constant dense<0.000000e+00> : vector<128xf32>
    %105 = vector.multi_reduction <add>, %104, %cst_70 [0] : vector<32x128xf32> to vector<128xf32>
    %106 = vector.shape_cast %105 : vector<128xf32> to vector<1x128xf32>
    %cst_71 = arith.constant 3.200000e+01 : f32
    %107 = vector.broadcast %cst_71 : f32 to vector<1x128xf32>
    %108 = arith.divf %106, %107 : vector<1x128xf32>
    %109 = arith.mulf %102, %102 : vector<1x128xf32>
    %110 = arith.subf %108, %109 : vector<1x128xf32>
    %cst_72 = arith.constant 9.99999974E-6 : f32
    %111 = vector.broadcast %cst_72 : f32 to vector<1x128xf32>
    %112 = arith.addf %110, %111 : vector<1x128xf32>
    %113 = math.rsqrt %112 : vector<1x128xf32>
    %114 = arith.mulf %96, %113 : vector<1x128xf32>
    %115 = vector.broadcast %114 : vector<1x128xf32> to vector<32x128xf32>
    %116 = arith.mulf %95, %115 : vector<32x128xf32>
    %117 = arith.mulf %102, %114 : vector<1x128xf32>
    %118 = arith.subf %97, %117 : vector<1x128xf32>
    %119 = vector.broadcast %118 : vector<1x128xf32> to vector<32x128xf32>
    %120 = arith.addf %116, %119 : vector<32x128xf32>
    %121 = arith.addf %120, %0 : vector<32x128xf32>
    %c0_73 = arith.constant 0 : index
    %c0_74 = arith.constant 0 : index
    %122 = vector.load %arg9[%c0_73, %c0_74] : memref<32x128xf32, #tpu.memory_space<vmem>>, vector<32x128xf32>
    tpu.vector_store %arg9[%c0_73, %c0_74], %121 {strides = array<i32>} : memref<32x128xf32, #tpu.memory_space<vmem>>, vector<32x128xf32>,
    return
  }
}

</mosaic_0001>

<bundles_post_ra>
// kernel: tpu_custom_call.1
= control target key start
LH: loop header
LB: loop body
LE: loop exit
PB: predicated region body
PF: predicated region fallthrough
CT: control target
= control target key end

     0   :  { %14 = vsyncpa [#allocation5], 0  ;;  %s2756_s0 = inlined_call_operand.hbm [shape: f32[32,128], index: 0, kind: input, shape index: {}]   ;;  %s2757_s1 = inlined_call_operand.hbm [shape: f32[3,128,128], index: 1, kind: input, shape index: {}]   ;;  %s2758_s2 = inlined_call_operand.hbm [shape: f32[3,128,128], index: 2, kind: input, shape index: {}]   ;;  %s2759_s3 = inlined_call_operand.hbm [shape: f32[128,128], index: 3, kind: input, shape index: {}]   ;;  %s2760_s4 = inlined_call_operand.vmem [shape: f32[1,128], index: 4, kind: input, shape index: {}]   ;;  %s2761_s5 = inlined_call_operand.vmem [shape: f32[1,128], index: 5, kind: input, shape index: {}]   ;;  %s2762_s6 = inlined_call_operand.vmem [shape: f32[1,128], index: 6, kind: input, shape index: {}]   ;;  %s2763_s7 = inlined_call_operand.vmem [shape: f32[1,128], index: 7, kind: input, shape index: {}]   ;;  %s2764_s8 = inlined_call_operand.vmem [shape: f32[1,128], index: 8, kind: input, shape index: {}]   ;;  %s2765_s9 = inlined_call_operand.hbm [shape: f32[32,128], index: 9, kind: output, shape index: {}]  }
   0x1   :  { %15 = vsyncpa [#allocation8], 0 }
   0x2   :  { %16 = vsyncpa [#allocation11], 0 }
   0x3   :  { %17 = vsyncpa [#allocation6], 0  ;;  %s2394_s30 = smov [#allocation7]   ;;  %s2395_s11 = smov [#allocation4]  }
   0x4   :  { %s35_s10 = sshll.u32 %s2394_s30, 4  ;;  %s23_s12 = sshll.u32 %s2395_s11, 4  ;;  %s36_s10 = int_to_ptr.vmem [resolvable:$true] %s35_s10  ;;  %s2451_s12 = int_to_ptr.vmem [resolvable:$true] %s23_s12 }
   0x5   :  { %s2276_s15 = scalar_lea.hbm %s2757_s1, 6144 }
   0x6   :  { %p2277_p0 = scmp.ne.s32.totalorder %s2757_s1, %s2276_s15  ;;  %p2280_p1 = scmp.lt.u32.totalorder %s2276_s15, %s2757_s1 }
   0x8   :  { %p2282_p2 = pnand %p2280_p1, %p2277_p0 }
   0xa   :  { %2285 = shalt.err (!%p2282_p2)
}
   0xb   :  { %s2286_s20 = scalar_lea.vmem %s36_s10, 6144  ;;  %p2291_p4 = scmp.lt.s32.totalorder %s36_s10, %s36_s10 }
   0xc   :  { %p2287_p3 = scmp.ne.s32.totalorder %s36_s10, %s2286_s20  ;;  %p2292_p5 = scmp.lt.s32.totalorder %s2286_s20, %s2286_s20 }
   0xe   :  { %p2293_p6 = por %p2292_p5, %p2291_p4 }
  0x10   :  { %p2294_p7 = pnand %p2293_p6, %p2287_p3 }
  0x12   :  { %2297 = shalt.err (!%p2294_p7)
}
  0x13   :  { %s2396_s21 = smov 128   ;;  %s2397_s22 = smov 8  }
  0x14   :  { %41 = dma.hbm_to_vmem [thread:$0]  %s2757_s1, 6144, %s36_s10, [#allocation8], %s2396_s21, %s2396_s21, %s2397_s22  }
  0x15   :  { %s2298_s27 = scalar_lea.hbm %s2756_s0, 512 }
  0x16   :  { %p2299_p8 = scmp.ne.s32.totalorder %s2756_s0, %s2298_s27  ;;  %p2302_p9 = scmp.lt.u32.totalorder %s2298_s27, %s2756_s0 }
  0x18   :  { %p2304_p10 = pnand %p2302_p9, %p2299_p8 }
  0x1a   :  { %2307 = shalt.err (!%p2304_p10)
}
  0x1b   :  { %s2308_s13 = scalar_lea.vmem %s2451_s12, 512  ;;  %p2313_p12 = scmp.lt.s32.totalorder %s2451_s12, %s2451_s12 }
  0x1c   :  { %p2309_p11 = scmp.ne.s32.totalorder %s2451_s12, %s2308_s13  ;;  %p2314_p13 = scmp.lt.s32.totalorder %s2308_s13, %s2308_s13 }
  0x1e   :  { %p2315_p0 = por %p2314_p13, %p2313_p12 }
  0x20   :  { %p2316_p1 = pnand %p2315_p0, %p2309_p11 }
  0x22   :  { %2319 = shalt.err (!%p2316_p1)
}
  0x23   :  { %29 = dma.hbm_to_vmem [thread:$0]  %s2756_s0, 512, %s2451_s12, [#allocation5], %s2396_s21, %s2396_s21, %s2397_s22  }
  0x24   :  { %s2398_s14 = smov [#allocation9]   ;;  %s2399_s16 = smov [#allocation10]  }
  0x25   :  { %s47_s15 = sshll.u32 %s2398_s14, 4  ;;  %s59_s17 = sshll.u32 %s2399_s16, 4  ;;  %s48_s15 = int_to_ptr.vmem [resolvable:$true] %s47_s15  ;;  %s2488_s17 = int_to_ptr.vmem [resolvable:$true] %s59_s17 }
  0x26   :  { %s2320_s20 = scalar_lea.hbm %s2758_s2, 6144 }
  0x27   :  { %p2321_p2 = scmp.ne.s32.totalorder %s2758_s2, %s2320_s20  ;;  %p2324_p3 = scmp.lt.u32.totalorder %s2320_s20, %s2758_s2 }
  0x29   :  { %p2326_p4 = pnand %p2324_p3, %p2321_p2 }
  0x2b   :  { %2329 = shalt.err (!%p2326_p4)
}
  0x2c   :  { %s2330_s0 = scalar_lea.vmem %s48_s15, 6144  ;;  %p2335_p6 = scmp.lt.s32.totalorder %s48_s15, %s48_s15 }
  0x2d   :  { %p2331_p5 = scmp.ne.s32.totalorder %s48_s15, %s2330_s0  ;;  %p2336_p7 = scmp.lt.s32.totalorder %s2330_s0, %s2330_s0 }
  0x2f   :  { %p2337_p8 = por %p2336_p7, %p2335_p6 }
  0x31   :  { %p2338_p9 = pnand %p2337_p8, %p2331_p5 }
  0x33   :  { %2341 = shalt.err (!%p2338_p9)
}
  0x34   :  { %53 = dma.hbm_to_vmem [thread:$0]  %s2758_s2, 6144, %s48_s15, [#allocation8], %s2396_s21, %s2396_s21, %s2397_s22  }
  0x35   :  { %s2342_s30 = scalar_lea.hbm %s2759_s3, 2048 }
  0x36   :  { %p2343_p10 = scmp.ne.s32.totalorder %s2759_s3, %s2342_s30  ;;  %p2346_p11 = scmp.lt.u32.totalorder %s2342_s30, %s2759_s3 }
  0x38   :  { %p2348_p12 = pnand %p2346_p11, %p2343_p10 }
  0x3a   :  { %2351 = shalt.err (!%p2348_p12)
}
  0x3b   :  { %s2352_s14 = scalar_lea.vmem %s2488_s17, 2048  ;;  %p2357_p0 = scmp.lt.s32.totalorder %s2488_s17, %s2488_s17 }
  0x3c   :  { %p2353_p13 = scmp.ne.s32.totalorder %s2488_s17, %s2352_s14  ;;  %p2358_p1 = scmp.lt.s32.totalorder %s2352_s14, %s2352_s14 }
  0x3e   :  { %p2359_p2 = por %p2358_p1, %p2357_p0 }
  0x40   :  { %p2360_p3 = pnand %p2359_p2, %p2353_p13 }
  0x42   :  { %2363 = shalt.err (!%p2360_p3)
}
  0x43   :  { %65 = dma.hbm_to_vmem [thread:$0]  %s2759_s3, 2048, %s2488_s17, [#allocation11], %s2396_s21, %s2396_s21, %s2397_s22  }
  0x44   :  { %2386 = dma.done.wait [#allocation5], 512  }
  0x45   :  { %2387 = vsyncadd [#allocation5], 4294966784 }
  0x46   :  { %2388 = dma.done.wait [#allocation8], 12288  }
  0x47   :  { %2389 = vsyncadd [#allocation8], 4294955008 }
  0x48   :  { %2390 = dma.done.wait [#allocation11], 2048  }
  0x49   :  { %2391 = vsyncadd [#allocation11], 4294965248  ;;  %v210_v0 = vld [vmem:[#allocation7 + $0x80] sm:$0xff]  ;;  %v211_v1 = vld [vmem:[#allocation7 + $0x88] sm:$0xff]  ;;  %v108_v37 = vlaneseq }
  0x4a   :  { %v212_v2 = vld [vmem:[#allocation7 + $0x90] sm:$0xff]  ;;  %v1929_v3 = vpack.c.bf16 %v211_v1, %v210_v0  ;;  %v213_v4 = vld [vmem:[#allocation7 + $0x98] sm:$0xff]  ;;  %v214_v6 = vld [vmem:[#allocation7 + $0xa0] sm:$0xff] }
  0x4b   :  { %v1933_v5 = vpack.c.bf16 %v213_v4, %v212_v2  ;;  %v215_v7 = vld [vmem:[#allocation7 + $0xa8] sm:$0xff]  ;;  %v2525_v9 = vld [vmem:[#allocation4] sm:$0xff]  ;;  %v216_v10 = vld [vmem:[#allocation7 + $0xb0] sm:$0xff]  ;;  %v2552_v43 = vshrl.u32 %v108_v37, 7 }
  0x4c   :  { %1930 = vmatprep.subr.bf16.mxu0 %v1929_v3  ;;  %v1937_v8 = vpack.c.bf16 %v215_v7, %v214_v6  ;;  %v217_v11 = vld [vmem:[#allocation7 + $0xb8] sm:$0xff]  ;;  %169 = vst [vmem:[#allocation2 + $0x1] sm:$0xff] %v2525_v9  ;;  %173 = vst [vmem:[#allocation3 - $0x1] sm:$0xfe] %v2525_v9  ;;  %1581 = vmatprep.mubr.f32.mxu0 %v2525_v9  ;;  %v2530_v12 = vld [vmem:[#allocation4 + $0x8] sm:$0xff] }
  0x4d   :  { %1932 = vmatpush3.bf16.msra.mxu0 %v1929_v3  ;;  %170 = vst [vmem:[#allocation2 + $0x9] sm:$0xff] %v2530_v12  ;;  %174 = vst [vmem:[#allocation3 + $0x7] sm:$0xff] %v2530_v12  ;;  %v1941_v13 = vpack.c.bf16 %v217_v11, %v216_v10  ;;  %v218_v14 = vld [vmem:[#allocation7 + $0xc0] sm:$0xff]  ;;  %v219_v15 = vld [vmem:[#allocation7 + $0xc8] sm:$0xff]  ;;  %v117_v50 = vand.u32 15, %v2552_v43 }
  0x4e   :  { %1934 = vmatprep.subr.bf16.mxu0 %v1933_v5  ;;  %v2534_v16 = vld [vmem:[#allocation4 + $0x10] sm:$0xff]  ;;  %v2538_v17 = vld [vmem:[#allocation4 + $0x18] sm:$0xff]  ;;  %v1945_v18 = vpack.c.bf16 %v219_v15, %v218_v14  ;;  %v222_v22 = vld [vmem:[#allocation7 + $0xe0] sm:$0xff] }
  0x4f   :  { %171 = vst [vmem:[#allocation2 + $0x11] sm:$0xff] %v2534_v16  ;;  %175 = vst [vmem:[#allocation3 + $0xf] sm:$0xff] %v2534_v16  ;;  %v220_v19 = vld [vmem:[#allocation7 + $0xd0] sm:$0xff]  ;;  %v221_v20 = vld [vmem:[#allocation7 + $0xd8] sm:$0xff]  ;;  %vm2564_vm0 = vcmp.ne.s32.totalorder %v117_v50, 0 }
  0x50   :  { %172 = vst [vmem:[#allocation2 + $0x19] sm:$0x7f] %v2538_v17  ;;  %176 = vst [vmem:[#allocation3 + $0x17] sm:$0xff] %v2538_v17  ;;  %v1949_v21 = vpack.c.bf16 %v221_v20, %v220_v19  ;;  %v223_v23 = vld [vmem:[#allocation7 + $0xe8] sm:$0xff]  ;;  %v92_v24 = vld [vmem:[#allocation10] sm:$0xff] }
  0x51   :  { %1936 = vmatpush3.bf16.msra.mxu0 %v1933_v5  ;;  %v93_v25 = vld [vmem:[#allocation10 + $0x8] sm:$0xff]  ;;  %v94_v26 = vld [vmem:[#allocation10 + $0x10] sm:$0xff]  ;;  %v1953_v27 = vpack.c.bf16 %v223_v23, %v222_v22  ;;  %v95_v30 = vld [vmem:[#allocation10 + $0x18] sm:$0xff] }
  0x52   :  { %1938 = vmatprep.subr.bf16.mxu0 %v1937_v8  ;;  %v224_v28 = vld [vmem:[#allocation7 + $0xf0] sm:$0xff]  ;;  %v2542_v29 = vpack.c.bf16 %v93_v25, %v92_v24  ;;  %v225_v31 = vld [vmem:[#allocation7 + $0xf8] sm:$0xff]  ;;  %v2544_v32 = vpack.c.bf16 %v95_v30, %v94_v26  ;;  %v96_v33 = vld [vmem:[#allocation10 + $0x20] sm:$0xff] }
  0x53   :  { %v97_v34 = vld [vmem:[#allocation10 + $0x28] sm:$0xff]  ;;  %v1957_v35 = vpack.c.bf16 %v225_v31, %v224_v28  ;;  %v193_v36 = vld [vmem:[#allocation7] sm:$0xff]  ;;  %v98_v40 = vld [vmem:[#allocation10 + $0x30] sm:$0xff] }
  0x54   :  { %2026 = vmatprep.subr.bf16.mxu1 %v2542_v29  ;;  %v2549_v38 = vpack.c.bf16 %v97_v34, %v96_v33  ;;  %v194_v39 = vld [vmem:[#allocation7 + $0x8] sm:$0xff]  ;;  %v99_v41 = vld [vmem:[#allocation10 + $0x38] sm:$0xff]  ;;  %v195_v45 = vld [vmem:[#allocation7 + $0x10] sm:$0xff] }
  0x55   :  { %1940 = vmatpush3.bf16.msra.mxu0 %v1937_v8  ;;  %2028 = vmatpush3.bf16.msra.mxu1 %v2542_v29  ;;  %v1961_v42 = vpack.c.bf16 %v194_v39, %v193_v36  ;;  %v2555_v44 = vpack.c.bf16 %v99_v41, %v98_v40  ;;  %v196_v46 = vld [vmem:[#allocation7 + $0x18] sm:$0xff]  ;;  %v100_v47 = vld [vmem:[#allocation10 + $0x40] sm:$0xff]  ;;  %v101_v48 = vld [vmem:[#allocation10 + $0x48] sm:$0xff] }
  0x56   :  { %1942 = vmatprep.subr.bf16.mxu0 %v1941_v13  ;;  %2030 = vmatprep.subr.bf16.mxu1 %v2544_v32  ;;  %v1965_v49 = vpack.c.bf16 %v196_v46, %v195_v45  ;;  %v197_v51 = vld [vmem:[#allocation7 + $0x20] sm:$0xff]  ;;  %v198_v52 = vld [vmem:[#allocation7 + $0x28] sm:$0xff]  ;;  %v2560_v53 = vpack.c.bf16 %v101_v48, %v100_v47  ;;  %v102_v54 = vld [vmem:[#allocation10 + $0x50] sm:$0xff] }
  0x57   :  { %v103_v55 = vld [vmem:[#allocation10 + $0x58] sm:$0xff]  ;;  %v1969_v56 = vpack.c.bf16 %v198_v52, %v197_v51  ;;  %v177_v57 = vld [vmem:[#allocation2] sm:$0xff]  ;;  %v199_v59 = vld [vmem:[#allocation7 + $0x30] sm:$0xff] }
  0x58   :  { %v200_v60 = vld [vmem:[#allocation7 + $0x38] sm:$0xff]  ;;  %v2570_v61 = vpack.c.bf16 %v103_v55, %v102_v54  ;;  %v104_v62 = vld [vmem:[#allocation10 + $0x60] sm:$0xff]  ;;  %v105_v63 = vld [vmem:[#allocation10 + $0x68] sm:$0xff] }
  0x59   :  { %1944 = vmatpush3.bf16.msra.mxu0 %v1941_v13  ;;  %2032 = vmatpush3.bf16.msra.mxu1 %v2544_v32  ;;  %v1973_v0 = vpack.c.bf16 %v200_v60, %v199_v59  ;;  %v201_v1 = vld [vmem:[#allocation7 + $0x40] sm:$0xff]  ;;  %v202_v2 = vld [vmem:[#allocation7 + $0x48] sm:$0xff]  ;;  %v2577_v3 = vpack.c.bf16 %v105_v63, %v104_v62  ;;  %v106_v4 = vld [vmem:[#allocation10 + $0x70] sm:$0xff]  ;;  %v112_v62 = vadd.s32 24, %v2552_v43 }
  0x5a   :  { %1946 = vmatprep.subr.bf16.mxu0 %v1945_v18  ;;  %2034 = vmatprep.subr.bf16.mxu1 %v2549_v38  ;;  %v107_v5 = vld [vmem:[#allocation10 + $0x78] sm:$0xff]  ;;  %v1977_v6 = vpack.c.bf16 %v202_v2, %v201_v1  ;;  %v203_v7 = vld [vmem:[#allocation7 + $0x50] sm:$0xff]  ;;  %v205_v13 = vld [vmem:[#allocation7 + $0x60] sm:$0xff] }
  0x5b   :  { %v204_v8 = vld [vmem:[#allocation7 + $0x58] sm:$0xff]  ;;  %v2581_v10 = vpack.c.bf16 %v107_v5, %v106_v4  ;;  %v206_v14 = vld [vmem:[#allocation7 + $0x68] sm:$0xff]  ;;  %v397_v22 = vld [vmem:[#allocation7 + $0x100] sm:$0xff]  ;;  %v138_v1 = vand.u32 15, %v112_v62 }
  0x5c   :  { %v1981_v11 = vpack.c.bf16 %v204_v8, %v203_v7  ;;  %v1985_v15 = vpack.c.bf16 %v206_v14, %v205_v13  ;;  %v208_v19 = vld [vmem:[#allocation7 + $0x78] sm:$0xff]  ;;  %v398_v23 = vld [vmem:[#allocation7 + $0x108] sm:$0xff]  ;;  %v399_v26 = vld [vmem:[#allocation7 + $0x110] sm:$0xff] }
  0x5d   :  { %1948 = vmatpush3.bf16.msra.mxu0 %v1945_v18  ;;  %2036 = vmatpush3.bf16.msra.mxu1 %v2549_v38  ;;  %v207_v18 = vld [vmem:[#allocation7 + $0x70] sm:$0xff]  ;;  %v1993_v24 = vpack.c.bf16 %v398_v23, %v397_v22  ;;  %v178_v28 = vld [vmem:[#allocation2 + $0x8] sm:$0xff]  ;;  %v401_v34 = vld [vmem:[#allocation7 + $0x120] sm:$0xff]  ;;  %vm2603_vm3 = vcmp.ne.s32.totalorder %v138_v1, 15 }
  0x5e   :  { %1950 = vmatprep.subr.bf16.mxu0 %v1949_v21  ;;  %2038 = vmatprep.subr.bf16.mxu1 %v2555_v44  ;;  %v1989_v20 = vpack.c.bf16 %v208_v19, %v207_v18  ;;  %v179_v31 = vld [vmem:[#allocation2 + $0x10] sm:$0xff]  ;;  %v180_v36 = vld [vmem:[#allocation2 + $0x18] sm:$0xff]  ;;  %v185_v39 = vld [vmem:[#allocation3] sm:$0xff] }
  0x5f   :  { %v403_v40 = vld [vmem:[#allocation7 + $0x130] sm:$0xff]  ;;  %v404_v41 = vld [vmem:[#allocation7 + $0x138] sm:$0xff]  ;;  %v405_v45 = vld [vmem:[#allocation7 + $0x140] sm:$0xff] }
  0x60   :  { %v406_v46 = vld [vmem:[#allocation7 + $0x148] sm:$0xff]  ;;  %v407_v48 = vld [vmem:[#allocation7 + $0x150] sm:$0xff]  ;;  %v409_v51 = vld [vmem:[#allocation7 + $0x160] sm:$0xff] }
  0x61   :  { %1952 = vmatpush3.bf16.msra.mxu0 %v1949_v21  ;;  %2040 = vmatpush3.bf16.msra.mxu1 %v2555_v44  ;;  %v111_v21 = vadd.s32 16, %v2552_v43  ;;  %v2009_v47 = vpack.c.bf16 %v406_v46, %v405_v45  ;;  %v410_v52 = vld [vmem:[#allocation7 + $0x168] sm:$0xff]  ;;  %v411_v55 = vld [vmem:[#allocation7 + $0x170] sm:$0xff]  ;;  %v188_v4 = vld [vmem:[#allocation3 + $0x18] sm:$0xff] }
  0x62   :  { %1954 = vmatprep.subr.bf16.mxu0 %v1953_v27  ;;  %2042 = vmatprep.subr.bf16.mxu1 %v2560_v53  ;;  %v2017_v54 = vpack.c.bf16 %v410_v52, %v409_v51  ;;  %v186_v63 = vld [vmem:[#allocation3 + $0x8] sm:$0xff]  ;;  %v187_v2 = vld [vmem:[#allocation3 + $0x10] sm:$0xff]  ;;  %v786_v19 = vld [vmem:[#allocation9 + $0x80] sm:$0xff] }
  0x63   :  { %v131_v25 = vand.u32 15, %v111_v21  ;;  %v788_v22 = vld [vmem:[#allocation9 + $0x90] sm:$0xff]  ;;  %v789_v23 = vld [vmem:[#allocation9 + $0x98] sm:$0xff] }
  0x64   :  { %v800_v46 = vld [vmem:[#allocation9 + $0xf0] sm:$0xff]  ;;  %v984_v33 = vld [vmem:[#allocation9 + $0x158] sm:$0xff] }
  0x65   :  { %1956 = vmatpush3.bf16.msra.mxu0 %v1953_v27  ;;  %2044 = vmatpush3.bf16.msra.mxu1 %v2560_v53  ;;  %v400_v27 = vld [vmem:[#allocation7 + $0x118] sm:$0xff]  ;;  %vm2588_vm1 = vcmp.ne.s32.totalorder %v131_v25, 0  ;;  %v790_v25 = vld [vmem:[#allocation9 + $0xa0] sm:$0xff] }
  0x66   :  { %1958 = vmatprep.subr.bf16.mxu0 %v1957_v35  ;;  %2046 = vmatprep.subr.bf16.mxu1 %v2570_v61  ;;  %v1997_v30 = vpack.c.bf16 %v400_v27, %v399_v26  ;;  %v791_v26 = vld [vmem:[#allocation9 + $0xa8] sm:$0xff] }
  0x67   :  { %v2097_v27 = vpack.c.bf16 %v791_v26, %v790_v25 }
  0x69   :  { %1960 = vmatpush3.bf16.msra.mxu0 %v1957_v35  ;;  %2048 = vmatpush3.bf16.msra.mxu1 %v2570_v61  ;;  %v402_v35 = vld [vmem:[#allocation7 + $0x128] sm:$0xff] }
  0x6a   :  { %1962 = vmatprep.subr.bf16.mxu0 %v1961_v42  ;;  %2050 = vmatprep.subr.bf16.mxu1 %v2577_v3  ;;  %v2001_v37 = vpack.c.bf16 %v402_v35, %v401_v34  ;;  %v795_v35 = vld [vmem:[#allocation9 + $0xc8] sm:$0xff] }
  0x6c   :  { %1582 = vmatmul.mubr.f32.vlgmr.msra.gmra.mrb[0].mxu0 %v2530_v12 }
  0x6d   :  { %1964 = vmatpush3.bf16.msra.mxu0 %v1961_v42  ;;  %1584 = vmatprep.mubr.f32.mxu0 %v2534_v16  ;;  %v2005_v42 = vpack.c.bf16 %v404_v41, %v403_v40  ;;  %v798_v41 = vld [vmem:[#allocation9 + $0xe0] sm:$0xff] }
  0x6e   :  { %1966 = vmatprep.subr.bf16.mxu0 %v1965_v49  ;;  %2052 = vmatpush3.bf16.msra.mxu1 %v2577_v3 }
  0x6f   :  { %2054 = vmatprep.subr.bf16.mxu1 %v2581_v10 }
  0x70   :  { %1585 = vmatmul.mubr.f32.gmra.mrb[2].mxu0 %v2538_v17 }
  0x71   :  { %1968 = vmatpush3.bf16.msra.mxu0 %v1965_v49  ;;  %1619 = vmatprep.mubr.msk.f32.mxu0 %vm2564_vm0, %v177_v57  ;;  %v408_v49 = vld [vmem:[#allocation7 + $0x158] sm:$0xff]  ;;  %v110_v57 = vadd.s32 8, %v2552_v43 }
  0x72   :  { %1970 = vmatprep.subr.bf16.mxu0 %v1969_v56  ;;  %2056 = vmatpush3.bf16.msra.mxu1 %v2581_v10  ;;  %v2013_v50 = vpack.c.bf16 %v408_v49, %v407_v48  ;;  %v769_v49 = vld [vmem:[#allocation9] sm:$0xff] }
  0x73   :  { %2058 = vmatprep.subr.bf16.mxu1 %v2542_v29  ;;  %v124_v60 = vand.u32 15, %v110_v57 }
  0x75   :  { %1972 = vmatpush3.bf16.msra.mxu0 %v1969_v56  ;;  %v412_v56 = vld [vmem:[#allocation7 + $0x178] sm:$0xff]  ;;  %vm2596_vm2 = vcmp.ne.s32.totalorder %v124_v60, 15 }
  0x76   :  { %1974 = vmatprep.subr.bf16.mxu0 %v1973_v0  ;;  %v2021_v59 = vpack.c.bf16 %v412_v56, %v411_v55 }
  0x79   :  { %1976 = vmatpush3.bf16.msra.mxu0 %v1973_v0 }
  0x7a   :  { %1978 = vmatprep.subr.bf16.mxu0 %v1977_v6 }
  0x7d   :  { %1980 = vmatpush3.bf16.msra.mxu0 %v1977_v6 }
  0x7e   :  { %1982 = vmatprep.subr.bf16.mxu0 %v1981_v11 }
  0x81   :  { %1984 = vmatpush3.bf16.msra.mxu0 %v1981_v11 }
  0x82   :  { %1986 = vmatprep.subr.bf16.mxu0 %v1985_v15 }
  0x85   :  { %1988 = vmatpush3.bf16.msra.mxu0 %v1985_v15 }
  0x86   :  { %1990 = vmatprep.subr.bf16.mxu0 %v1989_v20 }
  0x89   :  { %1992 = vmatpush3.bf16.msra.mxu0 %v1989_v20  ;;  %v787_v20 = vld [vmem:[#allocation9 + $0x88] sm:$0xff] }
  0x8a   :  { %1994 = vmatprep.subr.bf16.mxu0 %v1993_v24  ;;  %v2089_v21 = vpack.c.bf16 %v787_v20, %v786_v19 }
  0x8c   :  { %1620 = vmatmul.mubr.f32.vlgmr.msra.gmra.mrb[0].mxu0 %v178_v28  ;;  %v792_v28 = vld [vmem:[#allocation9 + $0xb0] sm:$0xff] }
  0x8d   :  { %1996 = vmatpush3.bf16.msra.mxu0 %v1993_v24  ;;  %1622 = vmatprep.mubr.msk.f32.mxu0 %vm2588_vm1, %v179_v31  ;;  %v2093_v24 = vpack.c.bf16 %v789_v23, %v788_v22  ;;  %v794_v31 = vld [vmem:[#allocation9 + $0xc0] sm:$0xff] }
  0x8e   :  { %1998 = vmatprep.subr.bf16.mxu0 %v1997_v30 }
  0x90   :  { %1623 = vmatmul.mubr.f32.gmra.mrb[2].mxu0 %v180_v36  ;;  %v2105_v36 = vpack.c.bf16 %v795_v35, %v794_v31 }
  0x91   :  { %2000 = vmatpush3.bf16.msra.mxu0 %v1997_v30  ;;  %1657 = vmatprep.mubr.f32.mxu0 %v185_v39  ;;  %v793_v30 = vld [vmem:[#allocation9 + $0xb8] sm:$0xff] }
  0x92   :  { %2002 = vmatprep.subr.bf16.mxu0 %v2001_v37  ;;  %v2101_v34 = vpack.c.bf16 %v793_v30, %v792_v28  ;;  %v797_v39 = vld [vmem:[#allocation9 + $0xd8] sm:$0xff] }
  0x95   :  { %2004 = vmatpush3.bf16.msra.mxu0 %v2001_v37  ;;  %v796_v37 = vld [vmem:[#allocation9 + $0xd0] sm:$0xff] }
  0x96   :  { %2006 = vmatprep.subr.bf16.mxu0 %v2005_v42  ;;  %v2109_v40 = vpack.c.bf16 %v797_v39, %v796_v37  ;;  %v502_v37 = vld [vmem:[%s2760_s4] sm:$0x1]  ;;  %v2667_v39 = vsub.s32 0, %v2552_v43 }
  0x99   :  { %2008 = vmatpush3.bf16.msra.mxu0 %v2005_v42  ;;  %v799_v42 = vld [vmem:[#allocation9 + $0xe8] sm:$0xff] }
  0x9a   :  { %2010 = vmatprep.subr.bf16.mxu0 %v2009_v47  ;;  %v2113_v45 = vpack.c.bf16 %v799_v42, %v798_v41  ;;  %v503_v42 = vld [vmem:[%s2761_s5] sm:$0x1] }
  0x9d   :  { %2012 = vmatpush3.bf16.msra.mxu0 %v2009_v47  ;;  %v801_v47 = vld [vmem:[#allocation9 + $0xf8] sm:$0xff] }
  0x9e   :  { %2014 = vmatprep.subr.bf16.mxu0 %v2013_v50  ;;  %v2117_v48 = vpack.c.bf16 %v801_v47, %v800_v46 }
  0xa1   :  { %2016 = vmatpush3.bf16.msra.mxu0 %v2013_v50  ;;  %v770_v50 = vld [vmem:[#allocation9 + $0x8] sm:$0xff] }
  0xa2   :  { %2018 = vmatprep.subr.bf16.mxu0 %v2017_v54  ;;  %v2660_v51 = vpack.c.bf16 %v770_v50, %v769_v49 }
  0xa5   :  { %2020 = vmatpush3.bf16.msra.mxu0 %v2017_v54 }
  0xa6   :  { %2022 = vmatprep.subr.bf16.mxu0 %v2021_v59 }
  0xa9   :  { %2024 = vmatpush3.bf16.msra.mxu0 %v2021_v59 }
  0xaa   :  { %2186 = vmatprep.subr.bf16.mxu0 %v2542_v29 }
  0xac   :  { %1658 = vmatmul.mubr.msk.f32.vlgmr.msra.gmra.mrb[0].mxu0 %vm2596_vm2, %v186_v63 }
  0xad   :  { %1660 = vmatprep.mubr.f32.mxu0 %v187_v2  ;;  %2188 = vmatpush3.bf16.msra.mxu0 %v2542_v29 }
  0xae   :  { %2190 = vmatprep.subr.bf16.mxu0 %v2544_v32 }
  0xb0   :  { %1661 = vmatmul.mubr.msk.f32.gmra.mrb[2].mxu0 %vm2603_vm3, %v188_v4 }
  0xb1   :  { %2192 = vmatpush3.bf16.msra.mxu0 %v2544_v32 }
  0xb2   :  { %2194 = vmatprep.subr.bf16.mxu0 %v2549_v38 }
  0xb5   :  { %2196 = vmatpush3.bf16.msra.mxu0 %v2549_v38 }
  0xb6   :  { %2198 = vmatprep.subr.bf16.mxu0 %v2555_v44 }
  0xb9   :  { %2200 = vmatpush3.bf16.msra.mxu0 %v2555_v44 }
  0xba   :  { %2202 = vmatprep.subr.bf16.mxu0 %v2560_v53 }
  0xbd   :  { %2204 = vmatpush3.bf16.msra.mxu0 %v2560_v53 }
  0xbe   :  { %2206 = vmatprep.subr.bf16.mxu0 %v2570_v61 }
  0xc1   :  { %2208 = vmatpush3.bf16.msra.mxu0 %v2570_v61 }
  0xc2   :  { %2210 = vmatprep.subr.bf16.mxu0 %v2577_v3 }
  0xc5   :  { %2212 = vmatpush3.bf16.msra.mxu0 %v2577_v3 }
  0xc6   :  { %2214 = vmatprep.subr.bf16.mxu0 %v2581_v10 }
  0xc9   :  { %2216 = vmatpush3.bf16.msra.mxu0 %v2581_v10 }
  0xca   :  { %2218 = vmatprep.subr.bf16.mxu0 %v2542_v29 }
 0x17f   :  { %v2625_v6 = vpop.f32.mrb[0].mxu0 }
 0x180   :  { %v2627_v7 = vpop.f32.mrb[1].mxu0  ;;  %v601_v14 = vmul.f32 %v2625_v6, %v2625_v6 }
 0x181   :  { %1695 = vmatprep.mubr.f32.mxu1 %v2627_v7  ;;  %v600_v13 = vmul.f32 %v2627_v7, %v2627_v7 }
 0x182   :  { %1696 = vmatmul.mubr.f32.vlgmr.msra.gmra.mrb[0].mxu1 %v2625_v6 }
 0x183   :  { %2060 = vmatpush3.bf16.msra.mxu1 %v2542_v29  ;;  %v2632_v8 = vpop.f32.mrb[2].mxu0 }
 0x184   :  { %v2634_v11 = vpop.f32.mrb[3].mxu0  ;;  %2062 = vmatprep.subr.bf16.mxu1 %v2544_v32  ;;  %v603_v18 = vmul.f32 %v2632_v8, %v2632_v8 }
 0x185   :  { %1698 = vmatprep.mubr.f32.mxu1 %v2634_v11  ;;  %v602_v15 = vmul.f32 %v2634_v11, %v2634_v11 }
 0x186   :  { %1699 = vmatmul.mubr.f32.gmra.mrb[2].mxu1 %v2632_v8 }
 0x187   :  { %2064 = vmatpush3.bf16.msra.mxu1 %v2544_v32  ;;  %1733 = vmatprep.mubr.f32.mxu1 %v600_v13 }
 0x188   :  { %2066 = vmatprep.subr.bf16.mxu1 %v2549_v38 }
 0x18b   :  { %2068 = vmatpush3.bf16.msra.mxu1 %v2549_v38 }
 0x18c   :  { %2070 = vmatprep.subr.bf16.mxu1 %v2555_v44 }
 0x18f   :  { %2072 = vmatpush3.bf16.msra.mxu1 %v2555_v44 }
 0x190   :  { %2074 = vmatprep.subr.bf16.mxu1 %v2560_v53 }
 0x193   :  { %2076 = vmatpush3.bf16.msra.mxu1 %v2560_v53 }
 0x194   :  { %2078 = vmatprep.subr.bf16.mxu1 %v2570_v61 }
 0x197   :  { %2080 = vmatpush3.bf16.msra.mxu1 %v2570_v61 }
 0x198   :  { %2082 = vmatprep.subr.bf16.mxu1 %v2577_v3 }
 0x19b   :  { %2084 = vmatpush3.bf16.msra.mxu1 %v2577_v3 }
 0x19c   :  { %2086 = vmatprep.subr.bf16.mxu1 %v2581_v10 }
 0x19f   :  { %2088 = vmatpush3.bf16.msra.mxu1 %v2581_v10 }
 0x1a0   :  { %2090 = vmatprep.subr.bf16.mxu1 %v2089_v21 }
 0x1a2   :  { %1734 = vmatmul.mubr.f32.vlgmr.msra.gmra.mrb[4].mxu1 %v601_v14 }
 0x1a3   :  { %1736 = vmatprep.mubr.f32.mxu1 %v602_v15  ;;  %2092 = vmatpush3.bf16.msra.mxu1 %v2089_v21 }
 0x1a4   :  { %2094 = vmatprep.subr.bf16.mxu1 %v2093_v24 }
 0x1a6   :  { %1737 = vmatmul.mubr.f32.gmra.mrb[6].mxu1 %v603_v18 }
 0x1a7   :  { %2096 = vmatpush3.bf16.msra.mxu1 %v2093_v24 }
 0x1a8   :  { %2098 = vmatprep.subr.bf16.mxu1 %v2097_v27 }
 0x1ab   :  { %2100 = vmatpush3.bf16.msra.mxu1 %v2097_v27 }
 0x1ac   :  { %2102 = vmatprep.subr.bf16.mxu1 %v2101_v34 }
 0x1af   :  { %2104 = vmatpush3.bf16.msra.mxu1 %v2101_v34 }
 0x1b0   :  { %2106 = vmatprep.subr.bf16.mxu1 %v2105_v36 }
 0x1b3   :  { %2108 = vmatpush3.bf16.msra.mxu1 %v2105_v36 }
 0x1b4   :  { %2110 = vmatprep.subr.bf16.mxu1 %v2109_v40 }
 0x1b7   :  { %2112 = vmatpush3.bf16.msra.mxu1 %v2109_v40 }
 0x1b8   :  { %2114 = vmatprep.subr.bf16.mxu1 %v2113_v45 }
 0x1bb   :  { %2116 = vmatpush3.bf16.msra.mxu1 %v2113_v45 }
 0x1bc   :  { %2118 = vmatprep.subr.bf16.mxu1 %v2117_v48 }
 0x1bf   :  { %2120 = vmatpush3.bf16.msra.mxu1 %v2117_v48 }
 0x1c0   :  { %2122 = vmatprep.subr.bf16.mxu1 %v2660_v51 }
 0x255   :  { %v1697_v52 = vpop.f32.mrb[0].mxu1 }
 0x256   :  { %v570_v54 = vpop.f32.mrb[1].mxu1 }
 0x257   :  { %v589_v55 = vadd.f32 %v1697_v52, %v570_v54  ;;  %v1336_v54 = vld [vmem:[%s2762_s6] ss:$0 sm:$0xff] }
 0x259   :  { %v1700_v56 = vpop.f32.mrb[2].mxu1 }
 0x25a   :  { %v580_v57 = vpop.f32.mrb[3].mxu1 }
 0x25b   :  { %v590_v59 = vadd.f32 %v589_v55, %v580_v57 }
 0x25d   :  { %v591_v60 = vadd.f32 %v1700_v56, %v590_v59 }
 0x25f   :  { %v592_v62 = vrot.slane %v591_v60, 4 }
 0x261   :  { %v593_v63 = vadd.f32 %v592_v62, %v591_v60  ;;  %v771_v60 = vld [vmem:[#allocation9 + $0x10] sm:$0xff]  ;;  %v772_v62 = vld [vmem:[#allocation9 + $0x18] sm:$0xff] }
 0x263   :  { %v594_v4 = vrot.slane %v593_v63, 2 }
 0x265   :  { %v595_v18 = vadd.f32 %v594_v4, %v593_v63 }
 0x267   :  { %v596_v21 = vrot.slane %v595_v18, 1 }
 0x269   :  { %v597_v24 = vadd.f32 %v596_v21, %v595_v18 }
 0x26b   :  { %v599_v27 = vmul.f32 0.03125, %v597_v24  ;;  %v778_v24 = vld [vmem:[#allocation9 + $0x48] sm:$0xff] }
 0x26d   :  { %v699_v31 = vmul.f32 %v599_v27, %v599_v27 }
 0x275   :  { %v1735_v1 = vpop.f32.mrb[4].mxu1 }
 0x276   :  { %v670_v2 = vpop.f32.mrb[5].mxu1 }
 0x277   :  { %v689_v13 = vadd.f32 %v1735_v1, %v670_v2  ;;  %v2125_v2 = vpack.c.bf16 %v772_v62, %v771_v60  ;;  %v983_v62 = vld [vmem:[#allocation9 + $0x150] sm:$0xff] }
 0x279   :  { %v1738_v14 = vpop.f32.mrb[6].mxu1 }
 0x27a   :  { %v680_v15 = vpop.f32.mrb[7].mxu1 }
 0x27b   :  { %v690_v19 = vadd.f32 %v689_v13, %v680_v15  ;;  %v774_v15 = vld [vmem:[#allocation9 + $0x28] sm:$0xff] }
 0x27d   :  { %v691_v20 = vadd.f32 %v1738_v14, %v690_v19  ;;  %v773_v14 = vld [vmem:[#allocation9 + $0x20] sm:$0xff]  ;;  %v775_v19 = vld [vmem:[#allocation9 + $0x30] sm:$0xff] }
 0x27e   :  { %v2129_v18 = vpack.c.bf16 %v774_v15, %v773_v14 }
 0x27f   :  { %v692_v22 = vrot.slane %v691_v20, 4 }
 0x281   :  { %v693_v23 = vadd.f32 %v692_v22, %v691_v20  ;;  %v776_v20 = vld [vmem:[#allocation9 + $0x38] sm:$0xff] }
 0x282   :  { %v2133_v22 = vpack.c.bf16 %v776_v20, %v775_v19 }
 0x283   :  { %v694_v25 = vrot.slane %v693_v23, 2 }
 0x285   :  { %v695_v26 = vadd.f32 %v694_v25, %v693_v23  ;;  %v777_v23 = vld [vmem:[#allocation9 + $0x40] sm:$0xff] }
 0x286   :  { %v2137_v25 = vpack.c.bf16 %v778_v24, %v777_v23 }
 0x287   :  { %v696_v28 = vrot.slane %v695_v26, 1 }
 0x289   :  { %v697_v30 = vadd.f32 %v696_v28, %v695_v26  ;;  %v779_v26 = vld [vmem:[#allocation9 + $0x50] sm:$0xff]  ;;  %v781_v28 = vld [vmem:[#allocation9 + $0x60] sm:$0xff] }
 0x28b   :  { %v698_v34 = vmul.f32 0.03125, %v697_v30  ;;  %v782_v30 = vld [vmem:[#allocation9 + $0x68] sm:$0xff] }
 0x28d   :  { %v700_v35 = vsub.f32 %v698_v34, %v699_v31  ;;  %v2145_v31 = vpack.c.bf16 %v782_v30, %v781_v28  ;;  %v783_v34 = vld [vmem:[#allocation9 + $0x70] sm:$0xff] }
 0x28f   :  { %v701_v36 = vadd.f32 1e-05, %v700_v35  ;;  %v784_v35 = vld [vmem:[#allocation9 + $0x78] sm:$0xff] }
 0x290   :  { %v2149_v58 = vpack.c.bf16 %v784_v35, %v783_v34 }
 0x291   :  { %2272 = vrsqrt.f32 %v701_v36  ;;  %v973_v36 = vld [vmem:[#allocation9 + $0x100] sm:$0xff] }
 0x29b   :  { %v2273_v40 = vpop.eup %2272 }
 0x29c   :  { %v703_v41 = vmul.f32 %v2273_v40, %v502_v37  ;;  %v974_v37 = vld [vmem:[#allocation9 + $0x108] sm:$0xff] }
 0x29d   :  { %v2153_v40 = vpack.c.bf16 %v974_v37, %v973_v36 }
 0x29e   :  { %v708_v45 = vrot.slane %v703_v41, %v2667_v39  ;;  %v714_v46 = vmul.f32 %v703_v41, %v599_v27  ;;  %v975_v41 = vld [vmem:[#allocation9 + $0x110] sm:$0xff] }
 0x2a0   :  { %v710_v47 = vmul.f32 %v708_v45, %v2627_v7  ;;  %v715_v48 = vsub.f32 %v503_v42, %v714_v46  ;;  %v711_v49 = vmul.f32 %v2625_v6, %v708_v45  ;;  %v712_v50 = vmul.f32 %v708_v45, %v2634_v11  ;;  %v976_v42 = vld [vmem:[#allocation9 + $0x118] sm:$0xff] }
 0x2a1   :  { %v713_v52 = vmul.f32 %v2632_v8, %v708_v45  ;;  %v2157_v45 = vpack.c.bf16 %v976_v42, %v975_v41 }
 0x2a2   :  { %v720_v43 = vrot.slane %v715_v48, %v2667_v39  ;;  %v978_v48 = vld [vmem:[#allocation9 + $0x128] sm:$0xff] }
 0x2a4   :  { %v722_v55 = vadd.f32 %v720_v43, %v710_v47  ;;  %v723_v56 = vadd.f32 %v720_v43, %v711_v49  ;;  %v724_v57 = vadd.f32 %v720_v43, %v712_v50  ;;  %v725_v59 = vadd.f32 %v720_v43, %v713_v52  ;;  %v977_v47 = vld [vmem:[#allocation9 + $0x120] sm:$0xff]  ;;  %v979_v43 = vld [vmem:[#allocation9 + $0x130] sm:$0xff] }
 0x2a5   :  { %v2161_v50 = vpack.c.bf16 %v978_v48, %v977_v47 }
 0x2a6   :  { %vm726_vm4 = vcmp.ge.f32.partialorder %v722_v55, 0.0  ;;  %v737_v7 = vmul.f32 %v1336_v54, %v722_v55  ;;  %vm727_vm5 = vcmp.ge.f32.partialorder %v723_v56, 0.0  ;;  %v738_v6 = vmul.f32 %v1336_v54, %v723_v56 }
 0x2a7   :  { %vm728_vm6 = vcmp.ge.f32.partialorder %v724_v57, 0.0  ;;  %v739_v11 = vmul.f32 %v1336_v54, %v724_v57  ;;  %vm729_vm7 = vcmp.ge.f32.partialorder %v725_v59, 0.0  ;;  %v740_v8 = vmul.f32 %v1336_v54, %v725_v59  ;;  %v980_v54 = vld [vmem:[#allocation9 + $0x138] sm:$0xff] }
 0x2a8   :  { %v741_v63 = vsel %vm726_vm4, %v722_v55, %v737_v7  ;;  %v742_v1 = vsel %vm727_vm5, %v723_v56, %v738_v6  ;;  %v2165_v56 = vpack.c.bf16 %v980_v54, %v979_v43  ;;  %v2173_v7 = vpack.c.bf16 %v984_v33, %v983_v62  ;;  %v985_v6 = vld [vmem:[#allocation9 + $0x160] sm:$0xff] }
 0x2a9   :  { %745 = vst [vmem:[#allocation2 + $0x1] sm:$0xff] %v741_v63  ;;  %749 = vst [vmem:[#allocation3 - $0x1] sm:$0xfe] %v741_v63  ;;  %1771 = vmatprep.mubr.f32.mxu1 %v741_v63  ;;  %v743_v4 = vsel %vm728_vm6, %v724_v57, %v739_v11  ;;  %v744_v13 = vsel %vm729_vm7, %v725_v59, %v740_v8  ;;  %v981_v57 = vld [vmem:[#allocation9 + $0x140] sm:$0xff]  ;;  %v982_v59 = vld [vmem:[#allocation9 + $0x148] sm:$0xff] }
 0x2aa   :  { %746 = vst [vmem:[#allocation2 + $0x9] sm:$0xff] %v742_v1  ;;  %750 = vst [vmem:[#allocation3 + $0x7] sm:$0xff] %v742_v1  ;;  %1772 = vmatmul.mubr.f32.vlgmr.msra.gmra.mrb[8].mxu1 %v742_v1  ;;  %v2169_v60 = vpack.c.bf16 %v982_v59, %v981_v57  ;;  %v986_v11 = vld [vmem:[#allocation9 + $0x168] sm:$0xff]  ;;  %v987_v63 = vld [vmem:[#allocation9 + $0x170] sm:$0xff] }
 0x2ab   :  { %747 = vst [vmem:[#allocation2 + $0x11] sm:$0xff] %v743_v4  ;;  %751 = vst [vmem:[#allocation3 + $0xf] sm:$0xff] %v743_v4  ;;  %2124 = vmatpush3.bf16.msra.mxu1 %v2660_v51  ;;  %1774 = vmatprep.mubr.f32.mxu1 %v743_v4  ;;  %v780_v51 = vld [vmem:[#allocation9 + $0x58] sm:$0xff]  ;;  %v2177_v8 = vpack.c.bf16 %v986_v11, %v985_v6 }
 0x2ac   :  { %748 = vst [vmem:[#allocation2 + $0x19] sm:$0x7f] %v744_v13  ;;  %752 = vst [vmem:[#allocation3 + $0x17] sm:$0xff] %v744_v13  ;;  %2126 = vmatprep.subr.bf16.mxu1 %v2125_v2  ;;  %v2141_v27 = vpack.c.bf16 %v780_v51, %v779_v26  ;;  %v988_v1 = vld [vmem:[#allocation9 + $0x178] sm:$0xff] }
 0x2ae   :  { %1775 = vmatmul.mubr.f32.gmra.mrb[10].mxu1 %v744_v13 }
 0x2af   :  { %2128 = vmatpush3.bf16.msra.mxu1 %v2125_v2  ;;  %v2181_v2 = vpack.c.bf16 %v988_v1, %v987_v63 }
 0x2b0   :  { %2130 = vmatprep.subr.bf16.mxu1 %v2129_v18  ;;  %v753_v21 = vld [vmem:[#allocation2] sm:$0xff] }
 0x2b1   :  { %1809 = vmatprep.mubr.msk.f32.mxu1 %vm2564_vm0, %v753_v21  ;;  %v754_v46 = vld [vmem:[#allocation2 + $0x8] sm:$0xff]  ;;  %v761_v55 = vld [vmem:[#allocation3] sm:$0xff] }
 0x2b2   :  { %v755_v49 = vld [vmem:[#allocation2 + $0x10] sm:$0xff]  ;;  %v762_v4 = vld [vmem:[#allocation3 + $0x8] sm:$0xff] }
 0x2b3   :  { %2132 = vmatpush3.bf16.msra.mxu1 %v2129_v18  ;;  %v756_v52 = vld [vmem:[#allocation2 + $0x18] sm:$0xff]  ;;  %v763_v13 = vld [vmem:[#allocation3 + $0x10] sm:$0xff] }
 0x2b4   :  { %2134 = vmatprep.subr.bf16.mxu1 %v2133_v22  ;;  %v764_v14 = vld [vmem:[#allocation3 + $0x18] sm:$0xff] }
 0x2b7   :  { %2136 = vmatpush3.bf16.msra.mxu1 %v2133_v22 }
 0x2b8   :  { %2138 = vmatprep.subr.bf16.mxu1 %v2137_v25 }
 0x2bb   :  { %2140 = vmatpush3.bf16.msra.mxu1 %v2137_v25 }
 0x2bc   :  { %2142 = vmatprep.subr.bf16.mxu1 %v2141_v27 }
 0x2bf   :  { %2144 = vmatpush3.bf16.msra.mxu1 %v2141_v27 }
 0x2c0   :  { %2146 = vmatprep.subr.bf16.mxu1 %v2145_v31 }
 0x2c3   :  { %2148 = vmatpush3.bf16.msra.mxu1 %v2145_v31 }
 0x2c4   :  { %2150 = vmatprep.subr.bf16.mxu1 %v2149_v58 }
 0x2c7   :  { %2152 = vmatpush3.bf16.msra.mxu1 %v2149_v58 }
 0x2c8   :  { %2154 = vmatprep.subr.bf16.mxu1 %v2153_v40 }
 0x2ca   :  { %1810 = vmatmul.mubr.f32.vlgmr.msra.gmra.mrb[8].mxu1 %v754_v46 }
 0x2cb   :  { %1812 = vmatprep.mubr.msk.f32.mxu1 %vm2588_vm1, %v755_v49  ;;  %2156 = vmatpush3.bf16.msra.mxu1 %v2153_v40 }
 0x2cc   :  { %2158 = vmatprep.subr.bf16.mxu1 %v2157_v45 }
 0x2ce   :  { %1813 = vmatmul.mubr.f32.gmra.mrb[10].mxu1 %v756_v52  ;;  %v1078_v52 = vld [vmem:[%s2763_s7] sm:$0x1]  ;;  %s2400_s7 = smov [#allocation12]  }
 0x2cf   :  { %2160 = vmatpush3.bf16.msra.mxu1 %v2157_v45  ;;  %1847 = vmatprep.mubr.f32.mxu1 %v761_v55  ;;  %v1079_v55 = vld [vmem:[%s2764_s8] sm:$0x1]  ;;  %s1314_s24 = sshll.u32 %s2400_s7, 4  ;;  %s1315_s24 = int_to_ptr.vmem [resolvable:$true] %s1314_s24 }
 0x2d0   :  { %2162 = vmatprep.subr.bf16.mxu1 %v2161_v50  ;;  %s2364_s8 = scalar_lea.vmem %s1315_s24, 512  ;;  %p2369_p5 = scmp.lt.s32.totalorder %s1315_s24, %s1315_s24 }
 0x2d1   :  { %p2365_p4 = scmp.ne.s32.totalorder %s1315_s24, %s2364_s8  ;;  %p2370_p6 = scmp.lt.s32.totalorder %s2364_s8, %s2364_s8 }
 0x2d3   :  { %2164 = vmatpush3.bf16.msra.mxu1 %v2161_v50  ;;  %p2371_p7 = por %p2370_p6, %p2369_p5 }
 0x2d4   :  { %2166 = vmatprep.subr.bf16.mxu1 %v2165_v56 }
 0x2d5   :  { %p2372_p8 = pnand %p2371_p7, %p2365_p4 }
 0x2d7   :  { %2168 = vmatpush3.bf16.msra.mxu1 %v2165_v56 }
 0x2d8   :  { %2170 = vmatprep.subr.bf16.mxu1 %v2169_v60 }
 0x2db   :  { %2172 = vmatpush3.bf16.msra.mxu1 %v2169_v60 }
 0x2dc   :  { %2174 = vmatprep.subr.bf16.mxu1 %v2173_v7 }
 0x2df   :  { %2176 = vmatpush3.bf16.msra.mxu1 %v2173_v7 }
 0x2e0   :  { %2178 = vmatprep.subr.bf16.mxu1 %v2177_v8 }
 0x2e3   :  { %2180 = vmatpush3.bf16.msra.mxu1 %v2177_v8 }
 0x2e4   :  { %2182 = vmatprep.subr.bf16.mxu1 %v2181_v2 }
 0x2e7   :  { %2184 = vmatpush3.bf16.msra.mxu1 %v2181_v2 }
 0x2ea   :  { %1848 = vmatmul.mubr.msk.f32.vlgmr.msra.gmra.mrb[8].mxu1 %vm2596_vm2, %v762_v4 }
 0x2eb   :  { %1850 = vmatprep.mubr.f32.mxu1 %v763_v13 }
 0x2ee   :  { %1851 = vmatmul.mubr.msk.f32.gmra.mrb[10].mxu1 %vm2603_vm3, %v764_v14 }
 0x3bd   :  { %v2690_v15 = vpop.f32.mrb[8].mxu1 }
 0x3be   :  { %v2692_v18 = vpop.f32.mrb[9].mxu1 }
 0x3bf   :  { %1885 = vmatprep.mubr.f32.mxu0 %v2692_v18  ;;  %v1175_v5 = vmul.f32 %v2692_v18, %v2692_v18 }
 0x3c0   :  { %1886 = vmatmul.mubr.f32.vlgmr.msra.gmra.mrb[4].mxu0 %v2690_v15 }
 0x3c1   :  { %2220 = vmatpush3.bf16.msra.mxu0 %v2542_v29  ;;  %v2697_v19 = vpop.f32.mrb[10].mxu1  ;;  %v1176_v29 = vmul.f32 %v2690_v15, %v2690_v15 }
 0x3c2   :  { %v2699_v0 = vpop.f32.mrb[11].mxu1  ;;  %2222 = vmatprep.subr.bf16.mxu0 %v2544_v32 }
 0x3c3   :  { %1888 = vmatprep.mubr.f32.mxu0 %v2699_v0 }
 0x3c4   :  { %1889 = vmatmul.mubr.f32.gmra.mrb[6].mxu0 %v2697_v19 }
 0x3c5   :  { %2224 = vmatpush3.bf16.msra.mxu0 %v2544_v32  ;;  %1923 = vmatprep.mubr.f32.mxu0 %v1175_v5  ;;  %v1177_v32 = vmul.f32 %v2699_v0, %v2699_v0 }
 0x3c6   :  { %2226 = vmatprep.subr.bf16.mxu0 %v2549_v38 }
 0x3c9   :  { %2228 = vmatpush3.bf16.msra.mxu0 %v2549_v38  ;;  %v1178_v38 = vmul.f32 %v2697_v19, %v2697_v19 }
 0x3ca   :  { %2230 = vmatprep.subr.bf16.mxu0 %v2555_v44 }
 0x3cd   :  { %2232 = vmatpush3.bf16.msra.mxu0 %v2555_v44 }
 0x3ce   :  { %2234 = vmatprep.subr.bf16.mxu0 %v2560_v53 }
 0x3d1   :  { %2236 = vmatpush3.bf16.msra.mxu0 %v2560_v53 }
 0x3d2   :  { %2238 = vmatprep.subr.bf16.mxu0 %v2570_v61 }
 0x3d5   :  { %2240 = vmatpush3.bf16.msra.mxu0 %v2570_v61 }
 0x3d6   :  { %2242 = vmatprep.subr.bf16.mxu0 %v2577_v3 }
 0x3d9   :  { %2244 = vmatpush3.bf16.msra.mxu0 %v2577_v3 }
 0x3da   :  { %2246 = vmatprep.subr.bf16.mxu0 %v2581_v10 }
 0x3dd   :  { %2248 = vmatpush3.bf16.msra.mxu0 %v2581_v10 }
 0x3e0   :  { %1924 = vmatmul.mubr.f32.vlgmr.msra.gmra.mrb[8].mxu0 %v1176_v29 }
 0x3e1   :  { %1926 = vmatprep.mubr.f32.mxu0 %v1177_v32 }
 0x3e4   :  { %1927 = vmatmul.mubr.f32.gmra.mrb[10].mxu0 %v1178_v38 }
 0x493   :  { %v1887_v44 = vpop.f32.mrb[4].mxu0 }
 0x494   :  { %v1146_v53 = vpop.f32.mrb[5].mxu0 }
 0x495   :  { %v1165_v61 = vadd.f32 %v1887_v44, %v1146_v53 }
 0x497   :  { %v1890_v3 = vpop.f32.mrb[6].mxu0 }
 0x498   :  { %v1156_v20 = vpop.f32.mrb[7].mxu0 }
 0x499   :  { %v1166_v21 = vadd.f32 %v1165_v61, %v1156_v20 }
 0x49b   :  { %v1167_v22 = vadd.f32 %v1890_v3, %v1166_v21 }
 0x49d   :  { %v1168_v10 = vrot.slane %v1167_v22, 4 }
 0x49f   :  { %v1169_v23 = vadd.f32 %v1168_v10, %v1167_v22 }
 0x4a1   :  { %v1170_v26 = vrot.slane %v1169_v23, 2 }
 0x4a3   :  { %v1171_v30 = vadd.f32 %v1170_v26, %v1169_v23 }
 0x4a5   :  { %v1172_v35 = vrot.slane %v1171_v30, 1 }
 0x4a7   :  { %v1173_v37 = vadd.f32 %v1172_v35, %v1171_v30 }
 0x4a9   :  { %v1174_v42 = vmul.f32 0.03125, %v1173_v37 }
 0x4ab   :  { %v1274_v47 = vmul.f32 %v1174_v42, %v1174_v42 }
 0x4b3   :  { %v1925_v24 = vpop.f32.mrb[8].mxu0 }
 0x4b4   :  { %v1245_v25 = vpop.f32.mrb[9].mxu0 }
 0x4b5   :  { %v1264_v51 = vadd.f32 %v1925_v24, %v1245_v25 }
 0x4b7   :  { %v1928_v27 = vpop.f32.mrb[10].mxu0 }
 0x4b8   :  { %v1255_v28 = vpop.f32.mrb[11].mxu0 }
 0x4b9   :  { %v1265_v31 = vadd.f32 %v1264_v51, %v1255_v28 }
 0x4bb   :  { %v1266_v34 = vadd.f32 %v1928_v27, %v1265_v31 }
 0x4bd   :  { %v1267_v58 = vrot.slane %v1266_v34, 4 }
 0x4bf   :  { %v1268_v36 = vadd.f32 %v1267_v58, %v1266_v34 }
 0x4c1   :  { %v1269_v40 = vrot.slane %v1268_v36, 2 }
 0x4c3   :  { %v1270_v41 = vadd.f32 %v1269_v40, %v1268_v36 }
 0x4c5   :  { %v1271_v45 = vrot.slane %v1270_v41, 1 }
 0x4c7   :  { %v1272_v46 = vadd.f32 %v1271_v45, %v1270_v41 }
 0x4c9   :  { %v1273_v48 = vmul.f32 0.03125, %v1272_v46 }
 0x4cb   :  { %v1275_v49 = vsub.f32 %v1273_v48, %v1274_v47 }
 0x4cd   :  { %v1276_v50 = vadd.f32 1e-05, %v1275_v49 }
 0x4cf   :  { %2274 = vrsqrt.f32 %v1276_v50 }
 0x4d9   :  { %v2275_v43 = vpop.eup %2274 }
 0x4da   :  { %v1278_v54 = vmul.f32 %v2275_v43, %v1078_v52 }
 0x4dc   :  { %v1283_v56 = vrot.slane %v1278_v54, %v2667_v39  ;;  %v1289_v57 = vmul.f32 %v1278_v54, %v1174_v42 }
 0x4de   :  { %v1285_v59 = vmul.f32 %v1283_v56, %v2692_v18  ;;  %v1286_v60 = vmul.f32 %v2690_v15, %v1283_v56  ;;  %v1287_v62 = vmul.f32 %v1283_v56, %v2699_v0  ;;  %v1288_v33 = vmul.f32 %v2697_v19, %v1283_v56 }
 0x4df   :  { %v1290_v7 = vsub.f32 %v1079_v55, %v1289_v57 }
 0x4e1   :  { %v1295_v6 = vrot.slane %v1290_v7, %v2667_v39 }
 0x4e3   :  { %v1297_v11 = vadd.f32 %v1295_v6, %v1285_v59  ;;  %v1298_v8 = vadd.f32 %v1295_v6, %v1286_v60  ;;  %v1299_v63 = vadd.f32 %v1295_v6, %v1287_v62  ;;  %v1300_v1 = vadd.f32 %v1295_v6, %v1288_v33 }
 0x4e5   :  { %v1301_v2 = vadd.f32 %v1297_v11, %v2525_v9  ;;  %v1302_v4 = vadd.f32 %v1298_v8, %v2530_v12  ;;  %v1303_v13 = vadd.f32 %v1299_v63, %v2534_v16  ;;  %v1304_v14 = vadd.f32 %v1300_v1, %v2538_v17 }
 0x4e7   :  { %1305 = vst [vmem:[#allocation12] sm:$0xff] %v1301_v2  ;;  %1306 = vst [vmem:[#allocation12 + $0x8] sm:$0xff] %v1302_v4 }
 0x4e8   :  { %1307 = vst [vmem:[#allocation12 + $0x10] sm:$0xff] %v1303_v13  ;;  %1308 = vst [vmem:[#allocation12 + $0x18] sm:$0xff] %v1304_v14 }
 0x4e9   :  { %2375 = shalt.err (!%p2372_p8)
}
 0x4ea   :  { %s2376_s0 = scalar_lea.hbm %s2765_s9, 512 }
 0x4eb   :  { %p2377_p9 = scmp.ne.s32.totalorder %s2765_s9, %s2376_s0  ;;  %p2380_p10 = scmp.lt.u32.totalorder %s2376_s0, %s2765_s9 }
 0x4ed   :  { %p2382_p11 = pnand %p2380_p10, %p2377_p9 }
 0x4ef   :  { %2385 = shalt.err (!%p2382_p11)
}
 0x4f0   :  { %1320 = dma.vmem_to_hbm [thread:$0]  %s1315_s24, 512, %s2765_s9, [#allocation6], %s2396_s21, %s2396_s21, %s2397_s22  }
 0x4f1   :  { %2392 = dma.done.wait [#allocation6], 512  }
 0x4f2   :  { %2393 = vsyncadd [#allocation6], 4294966784 }
 0x4f3   :  { %1324 = vsyncpa [#allocation5], 1 }
 0x4f4   :  { %1325 = vsyncpa [#allocation8], 1 }
 0x4f5   :  { %1326 = vsyncpa [#allocation11], 1 }
 0x4f6   :  { %1327 = vsyncpa [#allocation6], 1 }

</bundles_post_ra>
